<compile_context>
chip_gen: v5e
topology: v5e:2x2
jax: 0.10.0
libtpu: 0.0.40
codegen_flags: <defaults>
</compile_context>

<pallas_src>
import jax
import jax.numpy as jnp
from jax.experimental import pallas as pl
from jax.experimental.pallas import tpu as pltpu


def _round_up(x, m):
    return ((x + m - 1) // m) * m


def _block_spec(shape, index_map, *, single_buffer=False):
    """BlockSpec helper: single-buffer grid-invariant blocks when supported."""
    if single_buffer:
        try:
            return pl.BlockSpec(shape, index_map, pipeline_mode=pl.Buffered(1))
        except (TypeError, AttributeError):  # older jax without pipeline_mode/Buffered
            pass
    return pl.BlockSpec(shape, index_map)


# ---------------------------------------------------------------------------
# Fused kernel:  out = relu( (x @ V) * scale + b )
#   scale_ref : (1,) f32 in SMEM   (g / ||V||_F)
#   x_ref     : (tile_rows, in_dim)      matmul dtype (bf16 fast path or f32)
#   w_ref     : (in_dim, n_tile)         matmul dtype
#   b_ref     : (1, n_tile)              f32
#   o_ref     : (tile_rows, n_tile)      out dtype
# ---------------------------------------------------------------------------
def _wn_fc_relu_kernel(scale_ref, x_ref, w_ref, b_ref, o_ref):
    acc = jnp.dot(x_ref[...], w_ref[...], preferred_element_type=jnp.float32)
    y = acc * scale_ref[0] + b_ref[...]
    o_ref[...] = jnp.maximum(y, 0.0).astype(o_ref.dtype)


# ---------------------------------------------------------------------------
# One-time parameter prep (do this once, off the hot path).
# ---------------------------------------------------------------------------
def prepare_relu_weight_norm_fc_params(v, g, b, *, weight_dtype=jnp.bfloat16):
    """v: (in_dim, out_dim) weight_norm 'v' (transposed vs torch nn.Linear weight),
    g: scalar weight_norm 'g' (dim=None -> scalar), b: (out_dim,) bias."""
    v = jnp.asarray(v)
    in_dim, out_dim = v.shape
    out_p = _round_up(out_dim, 128)  # lane-dense output tiles / unmasked stores
    scale = (jnp.asarray(g, jnp.float32)
             / jnp.linalg.norm(v.astype(jnp.float32))).reshape(1).astype(jnp.float32)
    bp = jnp.asarray(b, jnp.float32)
    if out_p != out_dim:  # zero columns: do not change the result (sliced off later)
        v = jnp.pad(v, ((0, 0), (0, out_p - out_dim)))
        bp = jnp.pad(bp, (0, out_p - out_dim))
    return dict(w=v.astype(weight_dtype), b=bp.reshape(1, out_p),
                scale=scale, out_dim=out_dim)


# ---------------------------------------------------------------------------
# Hot-path forward.
# ---------------------------------------------------------------------------
def relu_weight_norm_fc_apply(x, params, *, block_rows=512, n_tile=None,
                              out_dtype=None,
                              weight_vmem_budget_bytes=32 * 1024 * 1024):
    assert block_rows % 8 == 0
    w, bias, scale, out_dim = params["w"], params["b"], params["scale"], params["out_dim"]
    in_dim, out_p = w.shape
    assert x.shape[-1] == in_dim
    lead = x.shape[:-1]
    out_dtype = jnp.dtype(out_dtype if out_dtype is not None else x.dtype)

    x2 = x.reshape(-1, in_dim).astype(w.dtype)   # match the matmul dtype (bf16 fast path)
    R = x2.shape[0]

    # ---- row tiling (grid axis i) ------------------------------------------
    if R <= block_rows:
        if R >= 64:
            # v7x: keep >= 2 parallel steps so both TensorCores get work.
            tile_rows = _round_up(pl.cdiv(R, 2), 8)
        else:
            tile_rows = R                      # whole (tiny) batch in one step
    else:
        tile_rows = block_rows
    num_row_tiles = pl.cdiv(R, tile_rows)

    # ---- N (out_p) tiling (grid axis j) --------------------------------------
    w_itemsize = jnp.dtype(w.dtype).itemsize
    if n_tile is None:
        if in_dim * out_p * w_itemsize <= weight_vmem_budget_bytes:
            n_tile = out_p                     # fully VMEM-resident weight
        else:
            n_tile = max(128, (weight_vmem_budget_bytes // (in_dim * w_itemsize))
                         // 128 * 128)
            n_tile = min(n_tile, out_p)
    else:
        n_tile = min(_round_up(n_tile, 128), out_p)
    num_col_tiles = pl.cdiv(out_p, n_tile)

    # j outer / i inner: a weight column tile is fetched once and reused over all row tiles.
    grid = (num_col_tiles, num_row_tiles)

    in_specs = [
        pl.BlockSpec(memory_space=pltpu.MemorySpace.SMEM),                  # scale (1,)
        _block_spec((tile_rows, in_dim), lambda j, i: (i, 0),
                    single_buffer=(num_row_tiles == 1)),                    # activations
        _block_spec((in_dim, n_tile), lambda j, i: (0, j),
                    single_buffer=(num_col_tiles == 1)),                    # weight
        _block_spec((1, n_tile), lambda j, i: (0, j),
                    single_buffer=(num_col_tiles == 1)),                    # bias
    ]
    out_spec = pl.BlockSpec((tile_rows, n_tile), lambda j, i: (i, j))

    # VMEM sizing: resident blocks single-buffered, streamed blocks double-buffered.
    need = (in_dim * n_tile * w_itemsize * (1 if num_col_tiles == 1 else 2)
            + n_tile * 4 * (1 if num_col_tiles == 1 else 2)
            + tile_rows * in_dim * w_itemsize * (1 if num_row_tiles == 1 else 2)
            + tile_rows * n_tile * out_dtype.itemsize * 2)
    vmem_limit = int(min(max(int(need * 1.25) + (2 << 20), 32 << 20), 64 << 20))

    cost = pl.CostEstimate(
        flops=2 * R * in_dim * out_p,
        bytes_accessed=int(x2.nbytes + w.nbytes + bias.nbytes
                           + R * out_p * out_dtype.itemsize),
        transcendentals=0)

    out = pl.pallas_call(
        _wn_fc_relu_kernel,
        out_shape=jax.ShapeDtypeStruct((R, out_p), out_dtype),
        grid=grid,
        in_specs=in_specs,
        out_specs=out_spec,
        compiler_params=pltpu.CompilerParams(
            dimension_semantics=("parallel", "parallel"),
            vmem_limit_bytes=vmem_limit),
        cost_estimate=cost,
    )(scale, x2, w, bias)

    return out[:, :out_dim].reshape(*lead, out_dim)


def relu_weight_norm_fc(x, v, g, b, *, weight_dtype=jnp.bfloat16, **kwargs):
    """Convenience wrapper. For repeated calls, run prepare_* once and call *_apply."""
    params = prepare_relu_weight_norm_fc_params(v, g, b, weight_dtype=weight_dtype)
    return relu_weight_norm_fc_apply(x, params, **kwargs)


# ---------------------------------------------------------------------------
# Pure-JAX reference (matches torch: weight_norm(nn.Linear, dim=None) -> ReLU)
# ---------------------------------------------------------------------------
def relu_weight_norm_fc_ref(x, v, g, b):
    v32 = v.astype(jnp.float32)
    w_eff = (jnp.asarray(g, jnp.float32) / jnp.linalg.norm(v32)) * v32
    y = jnp.matmul(x.astype(jnp.float32), w_eff,
                   precision=jax.lax.Precision.HIGHEST) + b.astype(jnp.float32)
    return jnp.maximum(y, 0.0)


if __name__ == "__main__":
    key = jax.random.PRNGKey(0)
    ks = jax.random.split(key, 9)

    # ---- Case 1: typical (batch, seq, in) -> (batch, seq, out); 1 col tile ----
    B, S, IN1, OUT1 = 2, 8, 256, 384
    x1 = jax.random.normal(ks[0], (B, S, IN1), jnp.float32)
    v1 = 0.05 * jax.random.normal(ks[1], (IN1, OUT1), jnp.float32)
    b1 = 0.05 * jax.random.normal(ks[2], (OUT1,), jnp.float32)
    g1 = jnp.linalg.norm(v1)          # torch weight_norm init: g = ||v||_F  ->  W_eff == v
    y1_ref = relu_weight_norm_fc_ref(x1, v1, g1, b1)

    p1_bf16 = prepare_relu_weight_norm_fc_params(v1, g1, b1)  # bf16 default fast path
    y1 = jax.block_until_ready(relu_weight_norm_fc_apply(x1, p1_bf16))
    assert y1.shape == (B, S, OUT1)
    assert jnp.allclose(y1, y1_ref, rtol=3e-2, atol=3e-2), float(
        jnp.max(jnp.abs(y1 - y1_ref)))

    p1_f32 = prepare_relu_weight_norm_fc_params(v1, g1, b1, weight_dtype=jnp.float32)
    y1f = jax.block_until_ready(relu_weight_norm_fc_apply(x1, p1_f32))
    assert jnp.allclose(y1f, y1_ref, rtol=1e-3, atol=1e-3), float(
        jnp.max(jnp.abs(y1f - y1_ref)))

    # ---- Case 2: ragged rows, out_dim not a lane multiple, forced N tiling ----
    R2, IN2, OUT2 = 13, 128, 200
    x2 = jax.random.normal(ks[3], (R2, IN2), jnp.float32)
    v2 = 0.1 * jax.random.normal(ks[4], (IN2, OUT2), jnp.float32)
    b2 = 0.1 * jax.random.normal(ks[5], (OUT2,), jnp.float32)
    g2 = jnp.float32(1.3)
    p2 = prepare_relu_weight_norm_fc_params(v2, g2, b2, weight_dtype=jnp.float32)
    y2 = jax.block_until_ready(relu_weight_norm_fc_apply(x2, p2, n_tile=128))  # 2 col tiles
    y2_ref = relu_weight_norm_fc_ref(x2, v2, g2, b2)
    assert y2.shape == (R2, OUT2)
    assert jnp.allclose(y2, y2_ref, rtol=1e-3, atol=1e-3), float(
        jnp.max(jnp.abs(y2 - y2_ref)))

    # ---- Case 3: R >= 64 exercises the 2-row-tile split (both v7x TCs busy) ----
    R3, IN3, OUT3 = 80, 128, 128
    x3 = jax.random.normal(ks[6], (R3, IN3), jnp.float32)
    v3 = 0.05 * jax.random.normal(ks[7], (IN3, OUT3), jnp.float32)
    b3 = 0.05 * jax.random.normal(ks[8], (OUT3,), jnp.float32)
    g3 = jnp.float32(0.8)
    y3 = jax.block_until_ready(relu_weight_norm_fc(x3, v3, g3, b3))  # bf16 default
    y3_ref = relu_weight_norm_fc_ref(x3, v3, g3, b3)
    assert y3.shape == (R3, OUT3)
    assert jnp.allclose(y3, y3_ref, rtol=3e-2, atol=3e-2), float(
        jnp.max(jnp.abs(y3 - y3_ref)))

    print("KERNEL_OK")
</pallas_src>

<mosaic_0001>
module attributes {stable_mosaic.version = 11 : i64} {
  func.func @_wn_fc_relu_kernel(%arg0: i32, %arg1: i32, %arg2: memref<1xf32, #tpu.memory_space<smem>>, %arg3: memref<16x256xbf16, #tpu.memory_space<vmem>>, %arg4: memref<256x384xbf16, #tpu.memory_space<vmem>>, %arg5: memref<1x384xf32, #tpu.memory_space<vmem>>, %arg6: memref<16x384xf32, #tpu.memory_space<vmem>>) attributes {dimension_semantics = [#tpu.dimension_semantics<parallel>, #tpu.dimension_semantics<parallel>], iteration_bounds = array<i64: 1, 1>, scalar_prefetch = 0 : i64, scratch_operands = 0 : i64, tpu.core_type = #tpu.core_type<tc>, window_params = [{transform_indices = @transform_0, window_bounds = array<i64: 1>}, {pipeline_mode = #tpu.pipeline_mode<synchronous>, transform_indices = @transform_1, window_bounds = array<i64: 16, 256>}, {pipeline_mode = #tpu.pipeline_mode<synchronous>, transform_indices = @transform_2, window_bounds = array<i64: 256, 384>}, {pipeline_mode = #tpu.pipeline_mode<synchronous>, transform_indices = @transform_3, window_bounds = array<i64: 1, 384>}, {transform_indices = @transform_4, window_bounds = array<i64: 16, 384>}]} {
    %c0 = arith.constant 0 : index
    %c0_0 = arith.constant 0 : index
    %0 = vector.load %arg3[%c0, %c0_0] : memref<16x256xbf16, #tpu.memory_space<vmem>>, vector<16x256xbf16>
    %c0_1 = arith.constant 0 : index
    %c0_2 = arith.constant 0 : index
    %1 = vector.load %arg4[%c0_1, %c0_2] : memref<256x384xbf16, #tpu.memory_space<vmem>>, vector<256x384xbf16>
    %cst = arith.constant dense<0.000000e+00> : vector<16x384xf32>
    %2 = tpu.matmul %0, %1, %cst {dimension_numbers = #tpu.dot_dimension_numbers<[1], [0], [0], [1], [0, 0, 1, 1], [], []>} : vector<16x256xbf16>, vector<256x384xbf16>, vector<16x384xf32> -> vector<16x384xf32>
    %c0_3 = arith.constant 0 : index
    %3 = memref.load %arg2[%c0_3] : memref<1xf32, #tpu.memory_space<smem>>
    %4 = vector.broadcast %3 : f32 to vector<16x384xf32>
    %5 = arith.mulf %2, %4 : vector<16x384xf32>
    %c0_4 = arith.constant 0 : index
    %c0_5 = arith.constant 0 : index
    %6 = vector.load %arg5[%c0_4, %c0_5] : memref<1x384xf32, #tpu.memory_space<vmem>>, vector<1x384xf32>
    %7 = vector.broadcast %6 : vector<1x384xf32> to vector<16x384xf32>
    %8 = arith.addf %5, %7 : vector<16x384xf32>
    %cst_6 = arith.constant 0.000000e+00 : f32
    %9 = vector.broadcast %cst_6 : f32 to vector<16x384xf32>
    %10 = arith.maximumf %8, %9 : vector<16x384xf32>
    %c0_7 = arith.constant 0 : index
    %c0_8 = arith.constant 0 : index
    %11 = vector.load %arg6[%c0_7, %c0_8] : memref<16x384xf32, #tpu.memory_space<vmem>>, vector<16x384xf32>
    tpu.vector_store %arg6[%c0_7, %c0_8], %10 {strides = array<i32>} : memref<16x384xf32, #tpu.memory_space<vmem>>, vector<16x384xf32>,
    return
  }
  func.func @transform_0(%arg0: i32, %arg1: i32) -> i32 {
    %c0_i32 = arith.constant 0 : i32
    %c0_i32_0 = arith.constant 0 : i32
    return %c0_i32 : i32
  }
  func.func @transform_1(%arg0: i32, %arg1: i32) -> (i32, i32) {
    %c0_i32 = arith.constant 0 : i32
    %c0_i32_0 = arith.constant 0 : i32
    return %arg1, %c0_i32 : i32, i32
  }
  func.func @transform_2(%arg0: i32, %arg1: i32) -> (i32, i32) {
    %c0_i32 = arith.constant 0 : i32
    %c0_i32_0 = arith.constant 0 : i32
    return %c0_i32, %arg0 : i32, i32
  }
  func.func @transform_3(%arg0: i32, %arg1: i32) -> (i32, i32) {
    %c0_i32 = arith.constant 0 : i32
    %c0_i32_0 = arith.constant 0 : i32
    return %c0_i32, %arg0 : i32, i32
  }
  func.func @transform_4(%arg0: i32, %arg1: i32) -> (i32, i32) {
    %c0_i32 = arith.constant 0 : i32
    return %arg1, %arg0 : i32, i32
  }
}

</mosaic_0001>

<bundles_post_ra>
// kernel: tpu_custom_call.1
= control target key start
LH: loop header
LB: loop body
LE: loop exit
PB: predicated region body
PF: predicated region fallthrough
CT: control target
= control target key end

     0   :  { %10 = vsyncpa [#allocation4], 0  ;;  %s917_s0 = inlined_call_operand.<no memory space> [shape: f32[1], index: 0, kind: input, shape index: {}]   ;;  %s918_s1 = inlined_call_operand.hbm [shape: bf16[16,256], index: 1, kind: input, shape index: {}]   ;;  %s919_s2 = inlined_call_operand.hbm [shape: bf16[256,384], index: 2, kind: input, shape index: {}]   ;;  %s920_s3 = inlined_call_operand.vmem [shape: f32[1,384], index: 3, kind: input, shape index: {}]   ;;  %s921_s4 = inlined_call_operand.hbm [shape: f32[16,384], index: 4, kind: output, shape index: {}]  }
   0x1   :  { %11 = vsyncpa [#allocation7], 0 }
   0x2   :  { %12 = vsyncpa [#allocation5], 0  ;;  %s19_s17 = sshll.u32 %s918_s1, 4  ;;  %s858_s18 = smov [#allocation3]   ;;  %s20_s17 = int_to_ptr.hbm [resolvable:$true] %s19_s17 }
   0x3   :  { %s21_s19 = sshll.u32 %s858_s18, 4  ;;  %s32_s22 = sshll.u32 %s919_s2, 4  ;;  %s22_s19 = int_to_ptr.vmem [resolvable:$true] %s21_s19  ;;  %s33_s22 = int_to_ptr.hbm [resolvable:$true] %s32_s22 }
   0x4   :  { %s859_s23 = smov 128   ;;  %s860_s24 = smov 8  }
   0x5   :  { %27 = dma.hbm_to_vmem [thread:$0]  %s20_s17, 256, %s22_s19, [#allocation4], %s859_s23, %s859_s23, %s860_s24  }
   0x6   :  { %s861_s25 = smov [#allocation6]   ;;  %s862_s27 = smov 192  }
   0x7   :  { %s34_s26 = sshll.u32 %s861_s25, 4  ;;  %s863_s28 = smov 12   ;;  %s35_s26 = int_to_ptr.vmem [resolvable:$true] %s34_s26 }
   0x8   :  { %40 = dma.hbm_to_vmem [thread:$0]  %s33_s22, 6144, %s35_s26, [#allocation7], %s862_s27, %s862_s27, %s863_s28  }
   0x9   :  { %852 = dma.done.wait [#allocation4], 256  }
   0xa   :  { %853 = vsyncadd [#allocation4], 4294967040 }
   0xb   :  { %854 = dma.done.wait [#allocation7], 6144  }
   0xc   :  { %855 = vsyncadd [#allocation7], 4294961152  ;;  %v615_v0 = vld [vmem:[#allocation6 + $0xa8] sm:$0xf]  ;;  %v745_v1 = vld [vmem:[#allocation6 + $0xb0] sm:$0xf0] }
   0xd   :  { %v711_v2 = vld [vmem:[#allocation6 + $0x168] sm:$0xf]  ;;  %v616_v3 = vor.u32 %v745_v1, %v615_v0  ;;  %v769_v4 = vld [vmem:[#allocation6 + $0x170] sm:$0xf0]  ;;  %v603_v5 = vld [vmem:[#allocation6 + $0x90] sm:$0xf] }
   0xe   :  { %v742_v6 = vld [vmem:[#allocation6 + $0x98] sm:$0xf0]  ;;  %v712_v7 = vor.u32 %v769_v4, %v711_v2  ;;  %v699_v8 = vld [vmem:[#allocation6 + $0x150] sm:$0xf]  ;;  %v591_v12 = vld [vmem:[#allocation6 + $0x78] sm:$0xf] }
   0xf   :  { %v766_v9 = vld [vmem:[#allocation6 + $0x158] sm:$0xf0]  ;;  %383 = vmatpush.bf16.msra.mxu0 %v616_v3  ;;  %v604_v10 = vor.u32 %v742_v6, %v603_v5  ;;  %v739_v13 = vld [vmem:[#allocation6 + $0x80] sm:$0xf0]  ;;  %v687_v14 = vld [vmem:[#allocation6 + $0x138] sm:$0xf] }
  0x10   :  { %397 = vmatpush.bf16.msra.mxu1 %v712_v7  ;;  %v700_v11 = vor.u32 %v766_v9, %v699_v8  ;;  %v763_v15 = vld [vmem:[#allocation6 + $0x140] sm:$0xf0]  ;;  %v744_v16 = vld [vmem:[#allocation6 + $0xac] sm:$0xf]  ;;  %v617_v17 = vld [vmem:[#allocation6 + $0xb4] sm:$0xf0]  ;;  %v592_v21 = vor.u32 %v739_v13, %v591_v12 }
  0x11   :  { %v620_v18 = vor.u32 %v744_v16, %v617_v17  ;;  %v768_v19 = vld [vmem:[#allocation6 + $0x16c] sm:$0xf]  ;;  %v713_v20 = vld [vmem:[#allocation6 + $0x174] sm:$0xf0]  ;;  %v579_v22 = vld [vmem:[#allocation6 + $0x60] sm:$0xf]  ;;  %v688_v25 = vor.u32 %v763_v15, %v687_v14 }
  0x12   :  { %v736_v23 = vld [vmem:[#allocation6 + $0x68] sm:$0xf0]  ;;  %v716_v24 = vor.u32 %v768_v19, %v713_v20  ;;  %v741_v26 = vld [vmem:[#allocation6 + $0x94] sm:$0xf]  ;;  %v605_v27 = vld [vmem:[#allocation6 + $0x9c] sm:$0xf0] }
  0x13   :  { %384 = vmatpush.bf16.msra.mxu0 %v604_v10  ;;  %411 = vmatpush.bf16.msra.mxu2 %v620_v18  ;;  %v765_v28 = vld [vmem:[#allocation6 + $0x154] sm:$0xf]  ;;  %v675_v29 = vld [vmem:[#allocation6 + $0x120] sm:$0xf]  ;;  %v760_v30 = vld [vmem:[#allocation6 + $0x128] sm:$0xf0]  ;;  %v608_v31 = vor.u32 %v741_v26, %v605_v27  ;;  %v580_v35 = vor.u32 %v736_v23, %v579_v22 }
  0x14   :  { %398 = vmatpush.bf16.msra.mxu1 %v700_v11  ;;  %425 = vmatpush.bf16.msra.mxu3 %v716_v24  ;;  %v701_v32 = vld [vmem:[#allocation6 + $0x15c] sm:$0xf0]  ;;  %v738_v34 = vld [vmem:[#allocation6 + $0x7c] sm:$0xf]  ;;  %v593_v36 = vld [vmem:[#allocation6 + $0x84] sm:$0xf0]  ;;  %v676_v39 = vor.u32 %v760_v30, %v675_v29 }
  0x15   :  { %v704_v33 = vor.u32 %v765_v28, %v701_v32  ;;  %v762_v37 = vld [vmem:[#allocation6 + $0x13c] sm:$0xf]  ;;  %v689_v38 = vld [vmem:[#allocation6 + $0x144] sm:$0xf0]  ;;  %v733_v41 = vld [vmem:[#allocation6 + $0x50] sm:$0xf0]  ;;  %v596_v43 = vor.u32 %v738_v34, %v593_v36 }
  0x16   :  { %v567_v40 = vld [vmem:[#allocation6 + $0x48] sm:$0xf]  ;;  %v757_v44 = vld [vmem:[#allocation6 + $0x110] sm:$0xf0]  ;;  %v692_v45 = vor.u32 %v762_v37, %v689_v38  ;;  %v735_v46 = vld [vmem:[#allocation6 + $0x64] sm:$0xf] }
  0x17   :  { %385 = vmatpush.bf16.msra.mxu0 %v592_v21  ;;  %v663_v42 = vld [vmem:[#allocation6 + $0x108] sm:$0xf]  ;;  %412 = vmatpush.bf16.msra.mxu2 %v608_v31  ;;  %v581_v47 = vld [vmem:[#allocation6 + $0x6c] sm:$0xf0]  ;;  %v759_v48 = vld [vmem:[#allocation6 + $0x124] sm:$0xf]  ;;  %v568_v50 = vor.u32 %v733_v41, %v567_v40 }
  0x18   :  { %399 = vmatpush.bf16.msra.mxu1 %v688_v25  ;;  %426 = vmatpush.bf16.msra.mxu3 %v704_v33  ;;  %v677_v49 = vld [vmem:[#allocation6 + $0x12c] sm:$0xf0]  ;;  %v664_v51 = vor.u32 %v757_v44, %v663_v42  ;;  %v730_v53 = vld [vmem:[#allocation6 + $0x38] sm:$0xf0]  ;;  %v584_v55 = vor.u32 %v735_v46, %v581_v47  ;;  %v732_v58 = vld [vmem:[#allocation6 + $0x4c] sm:$0xf] }
  0x19   :  { %v555_v52 = vld [vmem:[#allocation6 + $0x30] sm:$0xf]  ;;  %v754_v56 = vld [vmem:[#allocation6 + $0xf8] sm:$0xf0]  ;;  %v680_v57 = vor.u32 %v759_v48, %v677_v49  ;;  %v569_v59 = vld [vmem:[#allocation6 + $0x54] sm:$0xf0] }
  0x1a   :  { %v651_v54 = vld [vmem:[#allocation6 + $0xf0] sm:$0xf]  ;;  %v756_v60 = vld [vmem:[#allocation6 + $0x10c] sm:$0xf]  ;;  %v665_v61 = vld [vmem:[#allocation6 + $0x114] sm:$0xf0]  ;;  %v556_v62 = vor.u32 %v730_v53, %v555_v52  ;;  %v572_v3 = vor.u32 %v732_v58, %v569_v59 }
  0x1b   :  { %386 = vmatpush.bf16.msra.mxu0 %v580_v35  ;;  %413 = vmatpush.bf16.msra.mxu2 %v596_v43  ;;  %v652_v63 = vor.u32 %v754_v56, %v651_v54  ;;  %v543_v0 = vld [vmem:[#allocation6 + $0x18] sm:$0xf]  ;;  %v727_v1 = vld [vmem:[#allocation6 + $0x20] sm:$0xf0]  ;;  %v668_v5 = vor.u32 %v756_v60, %v665_v61  ;;  %v729_v6 = vld [vmem:[#allocation6 + $0x34] sm:$0xf] }
  0x1c   :  { %400 = vmatpush.bf16.msra.mxu1 %v676_v39  ;;  %427 = vmatpush.bf16.msra.mxu3 %v692_v45  ;;  %v639_v2 = vld [vmem:[#allocation6 + $0xd8] sm:$0xf]  ;;  %v751_v4 = vld [vmem:[#allocation6 + $0xe0] sm:$0xf0]  ;;  %v557_v7 = vld [vmem:[#allocation6 + $0x3c] sm:$0xf0]  ;;  %v544_v10 = vor.u32 %v727_v1, %v543_v0 }
  0x1d   :  { %v753_v8 = vld [vmem:[#allocation6 + $0xf4] sm:$0xf]  ;;  %v653_v9 = vld [vmem:[#allocation6 + $0xfc] sm:$0xf0]  ;;  %v724_v12 = vld [vmem:[#allocation6 + $0x8] sm:$0xf0]  ;;  %v640_v13 = vor.u32 %v751_v4, %v639_v2  ;;  %v560_v17 = vor.u32 %v729_v6, %v557_v7 }
  0x1e   :  { %v531_v11 = vld [vmem:[#allocation6] sm:$0xf]  ;;  %v748_v15 = vld [vmem:[#allocation6 + $0xc8] sm:$0xf0]  ;;  %v623_v16 = vld [vmem:[#allocation6 + $0xb0] sm:$0xf]  ;;  %v656_v21 = vor.u32 %v753_v8, %v653_v9 }
  0x1f   :  { %387 = vmatpush.bf16.msra.mxu0 %v568_v50  ;;  %414 = vmatpush.bf16.msra.mxu2 %v584_v55  ;;  %v627_v14 = vld [vmem:[#allocation6 + $0xc0] sm:$0xf]  ;;  %v746_v18 = vld [vmem:[#allocation6 + $0xb8] sm:$0xf0]  ;;  %v719_v19 = vld [vmem:[#allocation6 + $0x170] sm:$0xf]  ;;  %v532_v25 = vor.u32 %v724_v12, %v531_v11 }
  0x20   :  { %401 = vmatpush.bf16.msra.mxu1 %v664_v51  ;;  %428 = vmatpush.bf16.msra.mxu3 %v680_v57  ;;  %v770_v20 = vld [vmem:[#allocation6 + $0x178] sm:$0xf0]  ;;  %v523_v22 = vld [vmem:[#allocation3] sm:$0xf]  ;;  %v545_v24 = vld [vmem:[#allocation6 + $0x24] sm:$0xf0]  ;;  %v628_v29 = vor.u32 %v748_v15, %v627_v14  ;;  %v624_v30 = vor.u32 %v746_v18, %v623_v16 }
  0x21   :  { %v726_v23 = vld [vmem:[#allocation6 + $0x1c] sm:$0xf]  ;;  %v722_v26 = vld [vmem:[#allocation3 + $0x4] sm:$0xf0]  ;;  %v641_v28 = vld [vmem:[#allocation6 + $0xe4] sm:$0xf0]  ;;  %v720_v33 = vor.u32 %v770_v20, %v719_v19 }
  0x22   :  { %v750_v27 = vld [vmem:[#allocation6 + $0xdc] sm:$0xf]  ;;  %v721_v31 = vld [vmem:[#allocation3 + $0x4] sm:$0xf]  ;;  %v611_v34 = vld [vmem:[#allocation6 + $0x98] sm:$0xf]  ;;  %v548_v37 = vor.u32 %v726_v23, %v545_v24  ;;  %v898_v39 = vor.u32 %v722_v26, %v523_v22 }
  0x23   :  { %388 = vmatpush.bf16.msra.mxu0 %v556_v62  ;;  %415 = vmatpush.bf16.msra.mxu2 %v572_v3  ;;  %v525_v32 = vld [vmem:[#allocation3 + $0x8] sm:$0xf0]  ;;  %v743_v35 = vld [vmem:[#allocation6 + $0xa0] sm:$0xf0]  ;;  %v707_v36 = vld [vmem:[#allocation6 + $0x158] sm:$0xf]  ;;  %v644_v40 = vor.u32 %v750_v27, %v641_v28 }
  0x24   :  { %402 = vmatpush.bf16.msra.mxu1 %v652_v63  ;;  %429 = vmatpush.bf16.msra.mxu3 %v668_v5  ;;  %v767_v38 = vld [vmem:[#allocation6 + $0x160] sm:$0xf0]  ;;  %v533_v42 = vld [vmem:[#allocation6 + $0xc] sm:$0xf0]  ;;  %v900_v43 = vor.u32 %v721_v31, %v525_v32  ;;  %v612_v46 = vor.u32 %v743_v35, %v611_v34  ;;  %v599_v48 = vld [vmem:[#allocation6 + $0x80] sm:$0xf] }
  0x25   :  { %v723_v41 = vld [vmem:[#allocation6 + $0x4] sm:$0xf]  ;;  %v629_v45 = vld [vmem:[#allocation6 + $0xcc] sm:$0xf0]  ;;  %v708_v47 = vor.u32 %v767_v38, %v707_v36  ;;  %v740_v49 = vld [vmem:[#allocation6 + $0x88] sm:$0xf0] }
  0x26   :  { %v747_v44 = vld [vmem:[#allocation6 + $0xc4] sm:$0xf]  ;;  %v536_v50 = vor.u32 %v723_v41, %v533_v42  ;;  %v695_v51 = vld [vmem:[#allocation6 + $0x140] sm:$0xf]  ;;  %v764_v52 = vld [vmem:[#allocation6 + $0x148] sm:$0xf0]  ;;  %v600_v54 = vor.u32 %v740_v49, %v599_v48 }
  0x27   :  { %389 = vmatpush.bf16.msra.mxu0 %v544_v10  ;;  %416 = vmatpush.bf16.msra.mxu2 %v560_v17  ;;  %v632_v53 = vor.u32 %v747_v44, %v629_v45  ;;  %v696_v55 = vor.u32 %v764_v52, %v695_v51  ;;  %v587_v56 = vld [vmem:[#allocation6 + $0x68] sm:$0xf]  ;;  %v737_v57 = vld [vmem:[#allocation6 + $0x70] sm:$0xf0]  ;;  %v575_v62 = vld [vmem:[#allocation6 + $0x50] sm:$0xf] }
  0x28   :  { %403 = vmatpush.bf16.msra.mxu1 %v640_v13  ;;  %430 = vmatpush.bf16.msra.mxu3 %v656_v21  ;;  %v683_v58 = vld [vmem:[#allocation6 + $0x128] sm:$0xf]  ;;  %v761_v59 = vld [vmem:[#allocation6 + $0x130] sm:$0xf0]  ;;  %v588_v60 = vor.u32 %v737_v57, %v587_v56  ;;  %v734_v63 = vld [vmem:[#allocation6 + $0x58] sm:$0xf0] }
  0x29   :  { %v684_v61 = vor.u32 %v761_v59, %v683_v58  ;;  %v671_v0 = vld [vmem:[#allocation6 + $0x110] sm:$0xf]  ;;  %v758_v1 = vld [vmem:[#allocation6 + $0x118] sm:$0xf0]  ;;  %v576_v2 = vor.u32 %v734_v63, %v575_v62  ;;  %v563_v4 = vld [vmem:[#allocation6 + $0x38] sm:$0xf] }
  0x2a   :  { %v672_v3 = vor.u32 %v758_v1, %v671_v0  ;;  %v731_v5 = vld [vmem:[#allocation6 + $0x40] sm:$0xf0]  ;;  %v659_v6 = vld [vmem:[#allocation6 + $0xf8] sm:$0xf]  ;;  %v551_v10 = vld [vmem:[#allocation6 + $0x20] sm:$0xf] }
  0x2b   :  { %390 = vmatpush.bf16.msra.mxu0 %v532_v25  ;;  %417 = vmatpush.bf16.msra.mxu2 %v548_v37  ;;  %v755_v7 = vld [vmem:[#allocation6 + $0x100] sm:$0xf0]  ;;  %v564_v8 = vor.u32 %v731_v5, %v563_v4  ;;  %v728_v11 = vld [vmem:[#allocation6 + $0x28] sm:$0xf0]  ;;  %v647_v12 = vld [vmem:[#allocation6 + $0xe0] sm:$0xf]  ;;  %v468_v25 = vstv %s917_s0 }
  0x2c   :  { %404 = vmatpush.bf16.msra.mxu1 %v628_v29  ;;  %431 = vmatpush.bf16.msra.mxu3 %v644_v40  ;;  %v660_v9 = vor.u32 %v755_v7, %v659_v6  ;;  %v752_v13 = vld [vmem:[#allocation6 + $0xe8] sm:$0xf0]  ;;  %v552_v14 = vor.u32 %v728_v11, %v551_v10  ;;  %v539_v16 = vld [vmem:[#allocation6 + $0x8] sm:$0xf]  ;;  %v725_v17 = vld [vmem:[#allocation6 + $0x10] sm:$0xf0] }
  0x2d   :  { %v648_v15 = vor.u32 %v752_v13, %v647_v12  ;;  %v635_v18 = vld [vmem:[#allocation6 + $0xc8] sm:$0xf]  ;;  %v749_v19 = vld [vmem:[#allocation6 + $0xd0] sm:$0xf0]  ;;  %v540_v20 = vor.u32 %v725_v17, %v539_v16  ;;  %v475_v22 = vld [vmem:[%s920_s3] sm:$0x7] }
  0x2e   :  { %391 = vmatmul.bf16.vlgmr.msra.gmra.mxu0 %v898_v39  ;;  %v636_v21 = vor.u32 %v749_v19, %v635_v18  ;;  %v477_v27 = vperm.slane %v475_v22, 0  ;;  %s864_s0 = smov [#allocation8]   ;;  %s507_s7 = sshll.u32 %s921_s4, 4  ;;  %s508_s7 = int_to_ptr.hbm [resolvable:$true] %s507_s7 }
  0x2f   :  { %439 = vmatpush.bf16.msrb.mxu0 %v624_v30  ;;  %405 = vmatmul.bf16.vlgmr.msra.gmra.mxu1 %v900_v43  ;;  %s505_s3 = sshll.u32 %s864_s0, 4  ;;  %s865_s8 = smov 384   ;;  %s506_s3 = int_to_ptr.vmem [resolvable:$true] %s505_s3 }
  0x30   :  { %453 = vmatpush.bf16.msrb.mxu1 %v720_v33  ;;  %418 = vmatpush.bf16.msra.mxu2 %v536_v50  ;;  %s866_s9 = smov 24  }
  0x31   :  { %432 = vmatpush.bf16.msra.mxu3 %v632_v53  ;;  %v479_v53 = vperm.slane %v475_v22, 2 }
  0x33   :  { %440 = vmatpush.bf16.msrb.mxu0 %v612_v46  ;;  %419 = vmatmul.bf16.vlgmr.msra.gmra.mxu2 %v898_v39 }
  0x34   :  { %454 = vmatpush.bf16.msrb.mxu1 %v708_v47  ;;  %433 = vmatmul.bf16.vlgmr.msra.gmra.mxu3 %v900_v43 }
  0x37   :  { %441 = vmatpush.bf16.msrb.mxu0 %v600_v54 }
  0x38   :  { %455 = vmatpush.bf16.msrb.mxu1 %v696_v55 }
  0x3b   :  { %442 = vmatpush.bf16.msrb.mxu0 %v588_v60 }
  0x3c   :  { %456 = vmatpush.bf16.msrb.mxu1 %v684_v61 }
  0x3f   :  { %443 = vmatpush.bf16.msrb.mxu0 %v576_v2 }
  0x40   :  { %457 = vmatpush.bf16.msrb.mxu1 %v672_v3 }
  0x43   :  { %444 = vmatpush.bf16.msrb.mxu0 %v564_v8 }
  0x44   :  { %458 = vmatpush.bf16.msrb.mxu1 %v660_v9 }
  0x47   :  { %445 = vmatpush.bf16.msrb.mxu0 %v552_v14 }
  0x48   :  { %459 = vmatpush.bf16.msrb.mxu1 %v648_v15 }
  0x4b   :  { %446 = vmatpush.bf16.msrb.mxu0 %v540_v20 }
  0x4c   :  { %460 = vmatpush.bf16.msrb.mxu1 %v636_v21 }
  0x4e   :  { %447 = vmatmul.bf16.vlgmr.msrb.gmra.mxu0 %v898_v39  ;;  %v478_v39 = vperm.slane %v475_v22, 1 }
  0x4f   :  { %461 = vmatmul.bf16.vlgmr.msrb.gmra.mxu1 %v900_v43 }
  0xab   :  { %v392_v23 = vpop.f32.mrf.mxu0 }
  0xac   :  { %v406_v24 = vpop.f32.mrf.mxu1 }
  0xad   :  { %v407_v26 = vadd.f32 %v406_v24, %v392_v23 }
  0xaf   :  { %v469_v28 = vmul.f32 %v468_v25, %v407_v26 }
  0xb1   :  { %v483_v29 = vadd.f32 %v477_v27, %v469_v28 }
  0xb3   :  { %v489_v30 = vmax.f32 %v483_v29, 0.0  ;;  %v394_v31 = vpop.f32.mrf.mxu0 }
  0xb4   :  { %v408_v32 = vpop.f32.mrf.mxu1 }
  0xb5   :  { %495 = vst [vmem:[#allocation8] sm:$0xff] %v489_v30  ;;  %v409_v33 = vadd.f32 %v408_v32, %v394_v31 }
  0xb6   :  { %v420_v35 = vpop.f32.mrf.mxu2 }
  0xb7   :  { %v472_v34 = vmul.f32 %v468_v25, %v409_v33  ;;  %v434_v36 = vpop.f32.mrf.mxu3 }
  0xb8   :  { %v435_v38 = vadd.f32 %v434_v36, %v420_v35 }
  0xb9   :  { %v486_v37 = vadd.f32 %v477_v27, %v472_v34 }
  0xba   :  { %v470_v41 = vmul.f32 %v468_v25, %v435_v38 }
  0xbb   :  { %v492_v40 = vmax.f32 %v486_v37, 0.0 }
  0xbc   :  { %v484_v42 = vadd.f32 %v478_v39, %v470_v41 }
  0xbd   :  { %498 = vst [vmem:[#allocation8 + $0x18] sm:$0xff] %v492_v40 }
  0xbe   :  { %v490_v43 = vmax.f32 %v484_v42, 0.0  ;;  %v422_v44 = vpop.f32.mrf.mxu2 }
  0xbf   :  { %v436_v45 = vpop.f32.mrf.mxu3 }
  0xc0   :  { %496 = vst [vmem:[#allocation8 + $0x8] sm:$0xff] %v490_v43  ;;  %v437_v46 = vadd.f32 %v436_v45, %v422_v44 }
  0xc2   :  { %v473_v47 = vmul.f32 %v468_v25, %v437_v46 }
  0xc4   :  { %v487_v48 = vadd.f32 %v478_v39, %v473_v47 }
  0xc6   :  { %v493_v49 = vmax.f32 %v487_v48, 0.0 }
  0xc8   :  { %499 = vst [vmem:[#allocation8 + $0x20] sm:$0xff] %v493_v49 }
  0xcb   :  { %v448_v50 = vpop.f32.mrf.mxu0 }
  0xcc   :  { %v462_v51 = vpop.f32.mrf.mxu1 }
  0xcd   :  { %v463_v52 = vadd.f32 %v462_v51, %v448_v50 }
  0xcf   :  { %v471_v54 = vmul.f32 %v468_v25, %v463_v52 }
  0xd1   :  { %v485_v55 = vadd.f32 %v479_v53, %v471_v54 }
  0xd3   :  { %v491_v56 = vmax.f32 %v485_v55, 0.0  ;;  %v450_v57 = vpop.f32.mrf.mxu0 }
  0xd4   :  { %v464_v58 = vpop.f32.mrf.mxu1 }
  0xd5   :  { %497 = vst [vmem:[#allocation8 + $0x10] sm:$0xff] %v491_v56  ;;  %v465_v59 = vadd.f32 %v464_v58, %v450_v57 }
  0xd7   :  { %v474_v60 = vmul.f32 %v468_v25, %v465_v59 }
  0xd9   :  { %v488_v61 = vadd.f32 %v479_v53, %v474_v60 }
  0xdb   :  { %v494_v62 = vmax.f32 %v488_v61, 0.0 }
  0xdd   :  { %500 = vst [vmem:[#allocation8 + $0x28] sm:$0xff] %v494_v62 }
  0xde   :  { %513 = dma.vmem_to_hbm [thread:$0]  %s506_s3, 768, %s508_s7, [#allocation5], %s865_s8, %s865_s8, %s866_s9  }
  0xdf   :  { %856 = dma.done.wait [#allocation5], 768  }
  0xe0   :  { %857 = vsyncadd [#allocation5], 4294966528 }
  0xe1   :  { %518 = vsyncpa [#allocation4], 1 }
  0xe2   :  { %519 = vsyncpa [#allocation7], 1 }
  0xe3   :  { %520 = vsyncpa [#allocation5], 1 }

</bundles_post_ra>
